<compile_context>
chip_gen: v6e
topology: v6e:2x2x1
jax: 0.10.0
libtpu: 0.0.40
codegen_flags: <defaults>
</compile_context>

<pallas_src>
import math

import jax
import jax.numpy as jnp
from jax import lax
from jax.experimental import pallas as pl
from jax.experimental.pallas import tpu as pltpu

NUM_DIST_VALS = 255.0   # config.quantize['num_dist_vals']
LN_EPS = 1e-12          # config.layer_norm_eps (RoBERTa default)


# ---------------------------------------------------------------------------
# Kernels
# ---------------------------------------------------------------------------
def _ln_kernel(x_ref, gamma_ref, beta_ref, ln_ref):
    """LayerNorm over the last dim for one batch block."""
    x = x_ref[0]                                          # (S, H) f32
    mu = jnp.mean(x, axis=-1, keepdims=True)
    var = jnp.mean((x - mu) ** 2, axis=-1, keepdims=True)
    ln = (x - mu) / jnp.sqrt(var + LN_EPS)
    ln_ref[0] = ln * gamma_ref[0] + beta_ref[0]


def _qkv_kernel(scale_ref, ln_ref, wq_ref, bq_ref, wk_ref, bk_ref, wv_ref, bv_ref,
                q_ref, k_ref, v_ref):
    """Fused quantized Q/K/V projections: bf16 integer matmul + dequant + bias epilogue."""
    x = ln_ref[0]                                         # (S, H) bf16 integer values

    def proj(w_ref, b_ref, inv_s):
        acc = jnp.dot(x, w_ref[...], preferred_element_type=jnp.float32)
        return acc * inv_s + b_ref[...]

    q_ref[0] = proj(wq_ref, bq_ref, scale_ref[0])
    k_ref[0] = proj(wk_ref, bk_ref, scale_ref[1])
    v_ref[0] = proj(wv_ref, bv_ref, scale_ref[2])


_QKT_DIMS = (((1,), (1,)), ((), ()))                      # (tq, d) x (S, d) -> (tq, S)


def _masked_scores(q_ref, k_ref, mask_ref, inv_s_qk):
    q = q_ref[0, 0]                                       # (tq, d) bf16 integer values
    k = k_ref[0, 0]                                       # (S,  d) bf16 integer values
    s = lax.dot_general(q, k, _QKT_DIMS, preferred_element_type=jnp.float32)
    # inv_s_qk folds the 1/(s_q*s_k) dequant factor with 1/sqrt(head_size)
    return s * inv_s_qk + mask_ref[0, 0]                  # (tq, S)


def _attn_stats_kernel(scale_ref, q_ref, k_ref, mask_ref, l_ref):
    """Row-wise softmax denominators; global max|probs| == 1 / min(l)."""
    s = _masked_scores(q_ref, k_ref, mask_ref, scale_ref[0])
    m = jnp.max(s, axis=-1, keepdims=True)
    l_ref[0, 0] = jnp.sum(jnp.exp(s - m), axis=-1, keepdims=True)


def _attn_ctx_kernel(scale_ref, q_ref, k_ref, v_ref, mask_ref, ctx_ref):
    """Recompute scores/softmax per tile, quantize probs, integer matmul with V."""
    s = _masked_scores(q_ref, k_ref, mask_ref, scale_ref[0])
    m = jnp.max(s, axis=-1, keepdims=True)
    e = jnp.exp(s - m)
    p = e / jnp.sum(e, axis=-1, keepdims=True)            # softmax (dropout = identity, eval)
    p_i = jnp.round(p * scale_ref[1]).astype(jnp.bfloat16)
    ctx = jnp.dot(p_i, v_ref[0, 0], preferred_element_type=jnp.float32)
    ctx_ref[0, 0] = ctx * scale_ref[2]                    # dequant by 1/(s_p * s_v)


def _dense_kernel(scale_ref, x_ref, w_ref, b_ref, o_ref):
    """Quantized output projection (integer bf16 matmul + dequant + bias)."""
    acc = jnp.dot(x_ref[0], w_ref[...], preferred_element_type=jnp.float32)
    o_ref[0] = acc * scale_ref[0] + b_ref[...]


# ---------------------------------------------------------------------------
# Wrapper
# ---------------------------------------------------------------------------
def _quant_scale(t):
    alpha = jnp.maximum(jnp.max(jnp.abs(t)), 1e-20)
    return 0.5 * NUM_DIST_VALS / alpha


def _to_int_bf16(t, scale):
    # round(x*scale) is an integer in [-128, 128] -> exactly representable in bf16.
    return jnp.round(t * scale).astype(jnp.bfloat16)


def _pick_q_tile(S, max_tile=256):
    if S <= max_tile:
        return S
    for t in (max_tile, 128, 64, 32, 16, 8):
        if S % t == 0:
            return t
    return S


_SMEM_SPEC = pl.BlockSpec(memory_space=pltpu.MemorySpace.SMEM)
_PARALLEL1 = pltpu.CompilerParams(dimension_semantics=("parallel",))
_PARALLEL3 = pltpu.CompilerParams(dimension_semantics=("parallel",) * 3)


def attention_forward(hidden_states, attention_mask, params, num_heads):
    f32 = jnp.float32
    B, S, H = hidden_states.shape
    NH = num_heads
    d = H // NH
    tq = _pick_q_tile(S)
    n_qt = S // tq

    x = hidden_states.astype(f32)
    gamma = params['ln_gamma'].reshape(1, 1, H).astype(f32)
    beta = params['ln_beta'].reshape(1, 1, H).astype(f32)

    # ---- K1: LayerNorm ------------------------------------------------------
    ln = pl.pallas_call(
        _ln_kernel,
        out_shape=jax.ShapeDtypeStruct((B, S, H), f32),
        grid=(B,),
        in_specs=[pl.BlockSpec((1, S, H), lambda b: (b, 0, 0)),
                  pl.BlockSpec((1, 1, H), lambda b: (0, 0, 0)),
                  pl.BlockSpec((1, 1, H), lambda b: (0, 0, 0))],
        out_specs=pl.BlockSpec((1, S, H), lambda b: (b, 0, 0)),
        compiler_params=_PARALLEL1,
    )(x, gamma, beta)

    # ---- static weight quantization (once; cacheable across steps in eval) ---
    wq, wk, wv, wd = (params[n].astype(f32) for n in ('wq_t', 'wk_t', 'wv_t', 'wd_t'))
    s_wq, s_wk, s_wv, s_wd = (_quant_scale(w) for w in (wq, wk, wv, wd))
    wq_i, wk_i, wv_i, wd_i = (_to_int_bf16(w, s) for w, s in
                              ((wq, s_wq), (wk, s_wk), (wv, s_wv), (wd, s_wd)))
    bq, bk, bv, bd = (params[n].reshape(1, H).astype(f32) for n in ('bq', 'bk', 'bv', 'bd'))

    # ---- LN activation scale (cheap mem-bound reduction) + integer cast ------
    s_ln = _quant_scale(ln)
    ln_i = _to_int_bf16(ln, s_ln)

    # ---- K2: fused quantized Q/K/V projections --------------------------------
    qkv_scales = jnp.stack([1.0 / (s_ln * s_wq),
                            1.0 / (s_ln * s_wk),
                            1.0 / (s_ln * s_wv)]).astype(f32)
    hsp = pl.BlockSpec((1, S, H), lambda b: (b, 0, 0))
    wsp = pl.BlockSpec((H, H), lambda b: (0, 0))
    bsp = pl.BlockSpec((1, H), lambda b: (0, 0))
    q, k, v = pl.pallas_call(
        _qkv_kernel,
        out_shape=(jax.ShapeDtypeStruct((B, S, H), f32),) * 3,
        grid=(B,),
        in_specs=[_SMEM_SPEC, hsp, wsp, bsp, wsp, bsp, wsp, bsp],
        out_specs=(hsp,) * 3,
        compiler_params=_PARALLEL1,
    )(qkv_scales, ln_i, wq_i, bq, wk_i, bk, wv_i, bv)

    # ---- global Q/K/V scales; head-major integer layout [B, NH, S, d] ---------
    s_q, s_k, s_v = _quant_scale(q), _quant_scale(k), _quant_scale(v)

    def head_major_int(t, s):
        return jnp.transpose(_to_int_bf16(t, s).reshape(B, S, NH, d), (0, 2, 1, 3))

    q_i = head_major_int(q, s_q)
    k_i = head_major_int(k, s_k)
    v_i = head_major_int(v, s_v)
    mask_add = (-1000.0 * (1.0 - attention_mask.astype(f32))).reshape(B, 1, 1, S)

    inv_s_qk = (1.0 / (s_q * s_k)) / math.sqrt(d)

    q_spec = pl.BlockSpec((1, 1, tq, d), lambda b, h, t: (b, h, t, 0))
    kv_spec = pl.BlockSpec((1, 1, S, d), lambda b, h, t: (b, h, 0, 0))
    m_spec = pl.BlockSpec((1, 1, 1, S), lambda b, h, t: (b, 0, 0, 0))

    # ---- K3: softmax denominators (probs never materialized) ------------------
    l = pl.pallas_call(
        _attn_stats_kernel,
        out_shape=jax.ShapeDtypeStruct((B, NH, S, 1), f32),
        grid=(B, NH, n_qt),
        in_specs=[_SMEM_SPEC, q_spec, kv_spec, m_spec],
        out_specs=pl.BlockSpec((1, 1, tq, 1), lambda b, h, t: (b, h, t, 0)),
        compiler_params=_PARALLEL3,
    )(jnp.stack([inv_s_qk]).astype(f32), q_i, k_i, mask_add)

    # max |softmax probs| over the whole tensor == 1 / min(row denominator)
    alpha_p = jnp.maximum(1.0 / jnp.min(l), 1e-20)
    s_p = 0.5 * NUM_DIST_VALS / alpha_p

    # ---- K4: context = quant(probs) @ quant(V), per (batch, head, q-tile) -----
    ctx_scales = jnp.stack([inv_s_qk, s_p, 1.0 / (s_p * s_v)]).astype(f32)
    ctx_hm = pl.pallas_call(
        _attn_ctx_kernel,
        out_shape=jax.ShapeDtypeStruct((B, NH, S, d), f32),
        grid=(B, NH, n_qt),
        in_specs=[_SMEM_SPEC, q_spec, kv_spec, kv_spec, m_spec],
        out_specs=pl.BlockSpec((1, 1, tq, d), lambda b, h, t: (b, h, t, 0)),
        compiler_params=_PARALLEL3,
    )(ctx_scales, q_i, k_i, v_i, mask_add)

    # ---- K5: quantized output projection ---------------------------------------
    ctx = jnp.transpose(ctx_hm, (0, 2, 1, 3)).reshape(B, S, H)   # heads re-merged
    s_ctx = _quant_scale(ctx)
    ctx_i = _to_int_bf16(ctx, s_ctx)
    dense_scales = jnp.stack([1.0 / (s_ctx * s_wd)]).astype(f32)
    out = pl.pallas_call(
        _dense_kernel,
        out_shape=jax.ShapeDtypeStruct((B, S, H), f32),
        grid=(B,),
        in_specs=[_SMEM_SPEC, hsp, wsp, bsp],
        out_specs=hsp,
        compiler_params=_PARALLEL1,
    )(dense_scales, ctx_i, wd_i, bd)
    return out


# ---------------------------------------------------------------------------
# Plain-JAX reference mirroring the PyTorch forward (eval mode)
# ---------------------------------------------------------------------------
def attention_ref(hidden_states, attention_mask, params, num_heads):
    B, S, H = hidden_states.shape
    d = H // num_heads

    def quant(t):
        alpha = jnp.maximum(jnp.max(jnp.abs(t)), 1e-20)
        s = 0.5 * NUM_DIST_VALS / alpha
        return jnp.round(t * s) / s

    def qmm(a, b):
        return jnp.matmul(quant(a), quant(b))

    x = hidden_states
    mu = x.mean(-1, keepdims=True)
    var = ((x - mu) ** 2).mean(-1, keepdims=True)
    ln = (x - mu) / jnp.sqrt(var + LN_EPS) * params['ln_gamma'] + params['ln_beta']

    q = qmm(ln, params['wq_t']) + params['bq']
    k = qmm(ln, params['wk_t']) + params['bk']
    v = qmm(ln, params['wv_t']) + params['bv']

    def heads(t):
        return t.reshape(B, S, num_heads, d).transpose(0, 2, 1, 3)

    qh, kh, vh = heads(q), heads(k), heads(v)
    mask = -1000.0 * (1.0 - attention_mask)[:, None, None, :]
    scores = qmm(qh, kh.transpose(0, 1, 3, 2)) / math.sqrt(d) + mask
    probs = jax.nn.softmax(scores, axis=-1)
    ctx = qmm(probs, vh)                                   # dropout = identity (eval)
    ctx = ctx.transpose(0, 2, 1, 3).reshape(B, S, H)
    return qmm(ctx, params['wd_t']) + params['bd']


if __name__ == "__main__":
    B, S, H, NH = 2, 8, 32, 4

    key = jax.random.PRNGKey(0)
    keys = jax.random.split(key, 12)

    params = {
        'ln_gamma': 1.0 + 0.1 * jax.random.normal(keys[0], (H,), jnp.float32),
        'ln_beta':  0.1 * jax.random.normal(keys[1], (H,), jnp.float32),
        # weights stored pre-transposed: [in, out] == torch weight.T
        'wq_t': 0.05 * jax.random.normal(keys[2], (H, H), jnp.float32),
        'bq':   0.05 * jax.random.normal(keys[3], (H,), jnp.float32),
        'wk_t': 0.05 * jax.random.normal(keys[4], (H, H), jnp.float32),
        'bk':   0.05 * jax.random.normal(keys[5], (H,), jnp.float32),
        'wv_t': 0.05 * jax.random.normal(keys[6], (H, H), jnp.float32),
        'bv':   0.05 * jax.random.normal(keys[7], (H,), jnp.float32),
        'wd_t': 0.05 * jax.random.normal(keys[8], (H, H), jnp.float32),
        'bd':   0.05 * jax.random.normal(keys[9], (H,), jnp.float32),
    }

    hidden_states = jax.random.normal(keys[10], (B, S, H), jnp.float32)
    # mask: 1 = attend, 0 = padded (last two positions of each sequence padded)
    attention_mask = jnp.ones((B, S), jnp.float32).at[:, -2:].set(0.0)

    fwd = jax.jit(attention_forward, static_argnums=(3,))
    out = fwd(hidden_states, attention_mask, params, NH)
    out = jax.block_until_ready(out)

    ref = attention_ref(hidden_states, attention_mask, params, NH)
    # generous tolerance: quantization rounding near .5 boundaries may flip a step
    max_err = float(jnp.max(jnp.abs(out - ref)))
    assert out.shape == (B, S, H)
    assert max_err < 5e-2, f"mismatch vs reference: max_err={max_err}"

    print("KERNEL_OK")
</pallas_src>

<mosaic_0001>
module attributes {stable_mosaic.version = 11 : i64} {
  func.func @_ln_kernel(%arg0: i32, %arg1: memref<1x8x32xf32, #tpu.memory_space<vmem>>, %arg2: memref<1x1x32xf32, #tpu.memory_space<vmem>>, %arg3: memref<1x1x32xf32, #tpu.memory_space<vmem>>, %arg4: memref<1x8x32xf32, #tpu.memory_space<vmem>>) attributes {dimension_semantics = [#tpu.dimension_semantics<parallel>], iteration_bounds = array<i64: 2>, scalar_prefetch = 0 : i64, scratch_operands = 0 : i64, tpu.core_type = #tpu.core_type<tc>, window_params = [{transform_indices = @transform_0, window_bounds = array<i64: 1, 8, 32>}, {pipeline_mode = #tpu.pipeline_mode<synchronous>, transform_indices = @transform_1, window_bounds = array<i64: 1, 1, 32>}, {pipeline_mode = #tpu.pipeline_mode<synchronous>, transform_indices = @transform_2, window_bounds = array<i64: 1, 1, 32>}, {transform_indices = @transform_3, window_bounds = array<i64: 1, 8, 32>}]} {
    %c0 = arith.constant 0 : index
    %c0_0 = arith.constant 0 : index
    %c0_1 = arith.constant 0 : index
    %0 = vector.load %arg1[%c0, %c0_0, %c0_1] : memref<1x8x32xf32, #tpu.memory_space<vmem>>, vector<1x8x32xf32>
    %1 = vector.shape_cast %0 : vector<1x8x32xf32> to vector<8x32xf32>
    %cst = arith.constant dense<0.000000e+00> : vector<8xf32>
    %2 = vector.multi_reduction <add>, %1, %cst [1] : vector<8x32xf32> to vector<8xf32>
    %3 = vector.shape_cast %2 : vector<8xf32> to vector<8x1xf32>
    %cst_2 = arith.constant 3.200000e+01 : f32
    %4 = vector.broadcast %cst_2 : f32 to vector<8x1xf32>
    %5 = arith.divf %3, %4 : vector<8x1xf32>
    %6 = vector.broadcast %5 : vector<8x1xf32> to vector<8x32xf32>
    %7 = arith.subf %1, %6 : vector<8x32xf32>
    %8 = arith.mulf %7, %7 : vector<8x32xf32>
    %cst_3 = arith.constant dense<0.000000e+00> : vector<8xf32>
    %9 = vector.multi_reduction <add>, %8, %cst_3 [1] : vector<8x32xf32> to vector<8xf32>
    %10 = vector.shape_cast %9 : vector<8xf32> to vector<8x1xf32>
    %cst_4 = arith.constant 3.200000e+01 : f32
    %11 = vector.broadcast %cst_4 : f32 to vector<8x1xf32>
    %12 = arith.divf %10, %11 : vector<8x1xf32>
    %13 = vector.broadcast %5 : vector<8x1xf32> to vector<8x32xf32>
    %14 = arith.subf %1, %13 : vector<8x32xf32>
    %cst_5 = arith.constant 9.99999996E-13 : f32
    %15 = vector.broadcast %cst_5 : f32 to vector<8x1xf32>
    %16 = arith.addf %12, %15 : vector<8x1xf32>
    %17 = math.sqrt %16 : vector<8x1xf32>
    %18 = vector.broadcast %17 : vector<8x1xf32> to vector<8x32xf32>
    %19 = arith.divf %14, %18 : vector<8x32xf32>
    %c0_6 = arith.constant 0 : index
    %c0_7 = arith.constant 0 : index
    %c0_8 = arith.constant 0 : index
    %20 = vector.load %arg2[%c0_6, %c0_7, %c0_8] : memref<1x1x32xf32, #tpu.memory_space<vmem>>, vector<1x1x32xf32>
    %21 = vector.shape_cast %20 : vector<1x1x32xf32> to vector<1x32xf32>
    %22 = vector.broadcast %21 : vector<1x32xf32> to vector<8x32xf32>
    %23 = arith.mulf %19, %22 : vector<8x32xf32>
    %c0_9 = arith.constant 0 : index
    %c0_10 = arith.constant 0 : index
    %c0_11 = arith.constant 0 : index
    %24 = vector.load %arg3[%c0_9, %c0_10, %c0_11] : memref<1x1x32xf32, #tpu.memory_space<vmem>>, vector<1x1x32xf32>
    %25 = vector.shape_cast %24 : vector<1x1x32xf32> to vector<1x32xf32>
    %26 = vector.broadcast %25 : vector<1x32xf32> to vector<8x32xf32>
    %27 = arith.addf %23, %26 : vector<8x32xf32>
    %c0_12 = arith.constant 0 : index
    %c0_13 = arith.constant 0 : index
    %c0_14 = arith.constant 0 : index
    %28 = vector.load %arg4[%c0_12, %c0_13, %c0_14] : memref<1x8x32xf32, #tpu.memory_space<vmem>>, vector<1x8x32xf32>
    %29 = vector.shape_cast %28 : vector<1x8x32xf32> to vector<8x32xf32>
    %30 = vector.shape_cast %27 : vector<8x32xf32> to vector<1x8x32xf32>
    tpu.vector_store %arg4[%c0_12, %c0_13, %c0_14], %30 {strides = array<i32>} : memref<1x8x32xf32, #tpu.memory_space<vmem>>, vector<1x8x32xf32>,
    return
  }
  func.func @transform_0(%arg0: i32) -> (i32, i32, i32) {
    %c0_i32 = arith.constant 0 : i32
    %c0_i32_0 = arith.constant 0 : i32
    %c0_i32_1 = arith.constant 0 : i32
    return %arg0, %c0_i32, %c0_i32_0 : i32, i32, i32
  }
  func.func @transform_1(%arg0: i32) -> (i32, i32, i32) {
    %c0_i32 = arith.constant 0 : i32
    %c0_i32_0 = arith.constant 0 : i32
    %c0_i32_1 = arith.constant 0 : i32
    %c0_i32_2 = arith.constant 0 : i32
    return %c0_i32, %c0_i32_0, %c0_i32_1 : i32, i32, i32
  }
  func.func @transform_2(%arg0: i32) -> (i32, i32, i32) {
    %c0_i32 = arith.constant 0 : i32
    %c0_i32_0 = arith.constant 0 : i32
    %c0_i32_1 = arith.constant 0 : i32
    %c0_i32_2 = arith.constant 0 : i32
    return %c0_i32, %c0_i32_0, %c0_i32_1 : i32, i32, i32
  }
  func.func @transform_3(%arg0: i32) -> (i32, i32, i32) {
    %c0_i32 = arith.constant 0 : i32
    %c0_i32_0 = arith.constant 0 : i32
    %c0_i32_1 = arith.constant 0 : i32
    return %arg0, %c0_i32, %c0_i32_0 : i32, i32, i32
  }
}

module attributes {stable_mosaic.version = 11 : i64} {
  func.func @_qkv_kernel(%arg0: i32, %arg1: memref<3xf32, #tpu.memory_space<smem>>, %arg2: memref<1x8x32xbf16, #tpu.memory_space<vmem>>, %arg3: memref<32x32xbf16, #tpu.memory_space<vmem>>, %arg4: memref<1x32xf32, #tpu.memory_space<vmem>>, %arg5: memref<32x32xbf16, #tpu.memory_space<vmem>>, %arg6: memref<1x32xf32, #tpu.memory_space<vmem>>, %arg7: memref<32x32xbf16, #tpu.memory_space<vmem>>, %arg8: memref<1x32xf32, #tpu.memory_space<vmem>>, %arg9: memref<1x8x32xf32, #tpu.memory_space<vmem>>, %arg10: memref<1x8x32xf32, #tpu.memory_space<vmem>>, %arg11: memref<1x8x32xf32, #tpu.memory_space<vmem>>) attributes {dimension_semantics = [#tpu.dimension_semantics<parallel>], iteration_bounds = array<i64: 2>, scalar_prefetch = 0 : i64, scratch_operands = 0 : i64, tpu.core_type = #tpu.core_type<tc>, window_params = [{transform_indices = @transform_0, window_bounds = array<i64: 3>}, {transform_indices = @transform_1, window_bounds = array<i64: 1, 8, 32>}, {pipeline_mode = #tpu.pipeline_mode<synchronous>, transform_indices = @transform_2, window_bounds = array<i64: 32, 32>}, {pipeline_mode = #tpu.pipeline_mode<synchronous>, transform_indices = @transform_3, window_bounds = array<i64: 1, 32>}, {pipeline_mode = #tpu.pipeline_mode<synchronous>, transform_indices = @transform_4, window_bounds = array<i64: 32, 32>}, {pipeline_mode = #tpu.pipeline_mode<synchronous>, transform_indices = @transform_5, window_bounds = array<i64: 1, 32>}, {pipeline_mode = #tpu.pipeline_mode<synchronous>, transform_indices = @transform_6, window_bounds = array<i64: 32, 32>}, {pipeline_mode = #tpu.pipeline_mode<synchronous>, transform_indices = @transform_7, window_bounds = array<i64: 1, 32>}, {transform_indices = @transform_8, window_bounds = array<i64: 1, 8, 32>}, {transform_indices = @transform_9, window_bounds = array<i64: 1, 8, 32>}, {transform_indices = @transform_10, window_bounds = array<i64: 1, 8, 32>}]} {
    %c0 = arith.constant 0 : index
    %c0_0 = arith.constant 0 : index
    %c0_1 = arith.constant 0 : index
    %0 = vector.load %arg2[%c0, %c0_0, %c0_1] : memref<1x8x32xbf16, #tpu.memory_space<vmem>>, vector<1x8x32xbf16>
    %1 = vector.shape_cast %0 : vector<1x8x32xbf16> to vector<8x32xbf16>
    %c0_2 = arith.constant 0 : index
    %2 = memref.load %arg1[%c0_2] : memref<3xf32, #tpu.memory_space<smem>>
    %c0_3 = arith.constant 0 : index
    %c0_4 = arith.constant 0 : index
    %3 = vector.load %arg3[%c0_3, %c0_4] : memref<32x32xbf16, #tpu.memory_space<vmem>>, vector<32x32xbf16>
    %cst = arith.constant dense<0.000000e+00> : vector<8x32xf32>
    %4 = tpu.matmul %1, %3, %cst {dimension_numbers = #tpu.dot_dimension_numbers<[1], [0], [0], [1], [0, 0, 1, 1], [], []>} : vector<8x32xbf16>, vector<32x32xbf16>, vector<8x32xf32> -> vector<8x32xf32>
    %5 = vector.broadcast %2 : f32 to vector<8x32xf32>
    %6 = arith.mulf %4, %5 : vector<8x32xf32>
    %c0_5 = arith.constant 0 : index
    %c0_6 = arith.constant 0 : index
    %7 = vector.load %arg4[%c0_5, %c0_6] : memref<1x32xf32, #tpu.memory_space<vmem>>, vector<1x32xf32>
    %8 = vector.broadcast %7 : vector<1x32xf32> to vector<8x32xf32>
    %9 = arith.addf %6, %8 : vector<8x32xf32>
    %c0_7 = arith.constant 0 : index
    %c0_8 = arith.constant 0 : index
    %c0_9 = arith.constant 0 : index
    %10 = vector.load %arg9[%c0_7, %c0_8, %c0_9] : memref<1x8x32xf32, #tpu.memory_space<vmem>>, vector<1x8x32xf32>
    %11 = vector.shape_cast %10 : vector<1x8x32xf32> to vector<8x32xf32>
    %12 = vector.shape_cast %9 : vector<8x32xf32> to vector<1x8x32xf32>
    tpu.vector_store %arg9[%c0_7, %c0_8, %c0_9], %12 {strides = array<i32>} : memref<1x8x32xf32, #tpu.memory_space<vmem>>, vector<1x8x32xf32>,
    %c1 = arith.constant 1 : index
    %13 = memref.load %arg1[%c1] : memref<3xf32, #tpu.memory_space<smem>>
    %c0_10 = arith.constant 0 : index
    %c0_11 = arith.constant 0 : index
    %14 = vector.load %arg5[%c0_10, %c0_11] : memref<32x32xbf16, #tpu.memory_space<vmem>>, vector<32x32xbf16>
    %cst_12 = arith.constant dense<0.000000e+00> : vector<8x32xf32>
    %15 = tpu.matmul %1, %14, %cst_12 {dimension_numbers = #tpu.dot_dimension_numbers<[1], [0], [0], [1], [0, 0, 1, 1], [], []>} : vector<8x32xbf16>, vector<32x32xbf16>, vector<8x32xf32> -> vector<8x32xf32>
    %16 = vector.broadcast %13 : f32 to vector<8x32xf32>
    %17 = arith.mulf %15, %16 : vector<8x32xf32>
    %c0_13 = arith.constant 0 : index
    %c0_14 = arith.constant 0 : index
    %18 = vector.load %arg6[%c0_13, %c0_14] : memref<1x32xf32, #tpu.memory_space<vmem>>, vector<1x32xf32>
    %19 = vector.broadcast %18 : vector<1x32xf32> to vector<8x32xf32>
    %20 = arith.addf %17, %19 : vector<8x32xf32>
    %c0_15 = arith.constant 0 : index
    %c0_16 = arith.constant 0 : index
    %c0_17 = arith.constant 0 : index
    %21 = vector.load %arg10[%c0_15, %c0_16, %c0_17] : memref<1x8x32xf32, #tpu.memory_space<vmem>>, vector<1x8x32xf32>
    %22 = vector.shape_cast %21 : vector<1x8x32xf32> to vector<8x32xf32>
    %23 = vector.shape_cast %20 : vector<8x32xf32> to vector<1x8x32xf32>
    tpu.vector_store %arg10[%c0_15, %c0_16, %c0_17], %23 {strides = array<i32>} : memref<1x8x32xf32, #tpu.memory_space<vmem>>, vector<1x8x32xf32>,
    %c2 = arith.constant 2 : index
    %24 = memref.load %arg1[%c2] : memref<3xf32, #tpu.memory_space<smem>>
    %c0_18 = arith.constant 0 : index
    %c0_19 = arith.constant 0 : index
    %25 = vector.load %arg7[%c0_18, %c0_19] : memref<32x32xbf16, #tpu.memory_space<vmem>>, vector<32x32xbf16>
    %cst_20 = arith.constant dense<0.000000e+00> : vector<8x32xf32>
    %26 = tpu.matmul %1, %25, %cst_20 {dimension_numbers = #tpu.dot_dimension_numbers<[1], [0], [0], [1], [0, 0, 1, 1], [], []>} : vector<8x32xbf16>, vector<32x32xbf16>, vector<8x32xf32> -> vector<8x32xf32>
    %27 = vector.broadcast %24 : f32 to vector<8x32xf32>
    %28 = arith.mulf %26, %27 : vector<8x32xf32>
    %c0_21 = arith.constant 0 : index
    %c0_22 = arith.constant 0 : index
    %29 = vector.load %arg8[%c0_21, %c0_22] : memref<1x32xf32, #tpu.memory_space<vmem>>, vector<1x32xf32>
    %30 = vector.broadcast %29 : vector<1x32xf32> to vector<8x32xf32>
    %31 = arith.addf %28, %30 : vector<8x32xf32>
    %c0_23 = arith.constant 0 : index
    %c0_24 = arith.constant 0 : index
    %c0_25 = arith.constant 0 : index
    %32 = vector.load %arg11[%c0_23, %c0_24, %c0_25] : memref<1x8x32xf32, #tpu.memory_space<vmem>>, vector<1x8x32xf32>
    %33 = vector.shape_cast %32 : vector<1x8x32xf32> to vector<8x32xf32>
    %34 = vector.shape_cast %31 : vector<8x32xf32> to vector<1x8x32xf32>
    tpu.vector_store %arg11[%c0_23, %c0_24, %c0_25], %34 {strides = array<i32>} : memref<1x8x32xf32, #tpu.memory_space<vmem>>, vector<1x8x32xf32>,
    return
  }
  func.func @transform_0(%arg0: i32) -> i32 {
    %c0_i32 = arith.constant 0 : i32
    %c0_i32_0 = arith.constant 0 : i32
    return %c0_i32 : i32
  }
  func.func @transform_1(%arg0: i32) -> (i32, i32, i32) {
    %c0_i32 = arith.constant 0 : i32
    %c0_i32_0 = arith.constant 0 : i32
    %c0_i32_1 = arith.constant 0 : i32
    return %arg0, %c0_i32, %c0_i32_0 : i32, i32, i32
  }
  func.func @transform_2(%arg0: i32) -> (i32, i32) {
    %c0_i32 = arith.constant 0 : i32
    %c0_i32_0 = arith.constant 0 : i32
    %c0_i32_1 = arith.constant 0 : i32
    return %c0_i32, %c0_i32_0 : i32, i32
  }
  func.func @transform_3(%arg0: i32) -> (i32, i32) {
    %c0_i32 = arith.constant 0 : i32
    %c0_i32_0 = arith.constant 0 : i32
    %c0_i32_1 = arith.constant 0 : i32
    return %c0_i32, %c0_i32_0 : i32, i32
  }
  func.func @transform_4(%arg0: i32) -> (i32, i32) {
    %c0_i32 = arith.constant 0 : i32
    %c0_i32_0 = arith.constant 0 : i32
    %c0_i32_1 = arith.constant 0 : i32
    return %c0_i32, %c0_i32_0 : i32, i32
  }
  func.func @transform_5(%arg0: i32) -> (i32, i32) {
    %c0_i32 = arith.constant 0 : i32
    %c0_i32_0 = arith.constant 0 : i32
    %c0_i32_1 = arith.constant 0 : i32
    return %c0_i32, %c0_i32_0 : i32, i32
  }
  func.func @transform_6(%arg0: i32) -> (i32, i32) {
    %c0_i32 = arith.constant 0 : i32
    %c0_i32_0 = arith.constant 0 : i32
    %c0_i32_1 = arith.constant 0 : i32
    return %c0_i32, %c0_i32_0 : i32, i32
  }
  func.func @transform_7(%arg0: i32) -> (i32, i32) {
    %c0_i32 = arith.constant 0 : i32
    %c0_i32_0 = arith.constant 0 : i32
    %c0_i32_1 = arith.constant 0 : i32
    return %c0_i32, %c0_i32_0 : i32, i32
  }
  func.func @transform_8(%arg0: i32) -> (i32, i32, i32) {
    %c0_i32 = arith.constant 0 : i32
    %c0_i32_0 = arith.constant 0 : i32
    %c0_i32_1 = arith.constant 0 : i32
    return %arg0, %c0_i32, %c0_i32_0 : i32, i32, i32
  }
  func.func @transform_9(%arg0: i32) -> (i32, i32, i32) {
    %c0_i32 = arith.constant 0 : i32
    %c0_i32_0 = arith.constant 0 : i32
    %c0_i32_1 = arith.constant 0 : i32
    return %arg0, %c0_i32, %c0_i32_0 : i32, i32, i32
  }
  func.func @transform_10(%arg0: i32) -> (i32, i32, i32) {
    %c0_i32 = arith.constant 0 : i32
    %c0_i32_0 = arith.constant 0 : i32
    %c0_i32_1 = arith.constant 0 : i32
    return %arg0, %c0_i32, %c0_i32_0 : i32, i32, i32
  }
}

module attributes {stable_mosaic.version = 11 : i64} {
  func.func @_attn_stats_kernel(%arg0: i32, %arg1: i32, %arg2: i32, %arg3: memref<1xf32, #tpu.memory_space<smem>>, %arg4: memref<1x1x8x8xbf16, #tpu.memory_space<vmem>>, %arg5: memref<1x1x8x8xbf16, #tpu.memory_space<vmem>>, %arg6: memref<1x1x1x8xf32, #tpu.memory_space<vmem>>, %arg7: memref<1x1x8x1xf32, #tpu.memory_space<vmem>>) attributes {dimension_semantics = [#tpu.dimension_semantics<parallel>, #tpu.dimension_semantics<parallel>, #tpu.dimension_semantics<parallel>], iteration_bounds = array<i64: 2, 4, 1>, scalar_prefetch = 0 : i64, scratch_operands = 0 : i64, tpu.core_type = #tpu.core_type<tc>, window_params = [{transform_indices = @transform_0, window_bounds = array<i64: 1>}, {transform_indices = @transform_1, window_bounds = array<i64: 1, 1, 8, 8>}, {transform_indices = @transform_2, window_bounds = array<i64: 1, 1, 8, 8>}, {transform_indices = @transform_3, window_bounds = array<i64: 1, 1, 1, 8>}, {transform_indices = @transform_4, window_bounds = array<i64: 1, 1, 8, 1>}]} {
    %c0 = arith.constant 0 : index
    %0 = memref.load %arg3[%c0] : memref<1xf32, #tpu.memory_space<smem>>
    %c0_0 = arith.constant 0 : index
    %c0_1 = arith.constant 0 : index
    %c0_2 = arith.constant 0 : index
    %c0_3 = arith.constant 0 : index
    %1 = vector.load %arg4[%c0_0, %c0_1, %c0_2, %c0_3] : memref<1x1x8x8xbf16, #tpu.memory_space<vmem>>, vector<1x1x8x8xbf16>
    %2 = vector.shape_cast %1 : vector<1x1x8x8xbf16> to vector<8x8xbf16>
    %c0_4 = arith.constant 0 : index
    %c0_5 = arith.constant 0 : index
    %c0_6 = arith.constant 0 : index
    %c0_7 = arith.constant 0 : index
    %3 = vector.load %arg5[%c0_4, %c0_5, %c0_6, %c0_7] : memref<1x1x8x8xbf16, #tpu.memory_space<vmem>>, vector<1x1x8x8xbf16>
    %4 = vector.shape_cast %3 : vector<1x1x8x8xbf16> to vector<8x8xbf16>
    %cst = arith.constant dense<0.000000e+00> : vector<8x8xf32>
    %5 = tpu.matmul %2, %4, %cst {dimension_numbers = #tpu.dot_dimension_numbers<[1], [1], [0], [0], [0, 0, 1, 0], [], []>} : vector<8x8xbf16>, vector<8x8xbf16>, vector<8x8xf32> -> vector<8x8xf32>
    %6 = vector.broadcast %0 : f32 to vector<8x8xf32>
    %7 = arith.mulf %5, %6 : vector<8x8xf32>
    %c0_8 = arith.constant 0 : index
    %c0_9 = arith.constant 0 : index
    %c0_10 = arith.constant 0 : index
    %c0_11 = arith.constant 0 : index
    %8 = vector.load %arg6[%c0_8, %c0_9, %c0_10, %c0_11] : memref<1x1x1x8xf32, #tpu.memory_space<vmem>>, vector<1x1x1x8xf32>
    %9 = vector.shape_cast %8 : vector<1x1x1x8xf32> to vector<1x8xf32>
    %10 = vector.broadcast %9 : vector<1x8xf32> to vector<8x8xf32>
    %11 = arith.addf %7, %10 : vector<8x8xf32>
    %cst_12 = arith.constant dense<0xFF800000> : vector<8xf32>
    %12 = vector.multi_reduction <maximumf>, %11, %cst_12 [1] : vector<8x8xf32> to vector<8xf32>
    %13 = vector.shape_cast %12 : vector<8xf32> to vector<8x1xf32>
    %14 = vector.broadcast %13 : vector<8x1xf32> to vector<8x8xf32>
    %15 = arith.subf %11, %14 : vector<8x8xf32>
    %16 = math.exp %15 : vector<8x8xf32>
    %cst_13 = arith.constant dense<0.000000e+00> : vector<8xf32>
    %17 = vector.multi_reduction <add>, %16, %cst_13 [1] : vector<8x8xf32> to vector<8xf32>
    %18 = vector.shape_cast %17 : vector<8xf32> to vector<8x1xf32>
    %c0_14 = arith.constant 0 : index
    %c0_15 = arith.constant 0 : index
    %c0_16 = arith.constant 0 : index
    %c0_17 = arith.constant 0 : index
    %19 = vector.load %arg7[%c0_14, %c0_15, %c0_16, %c0_17] : memref<1x1x8x1xf32, #tpu.memory_space<vmem>>, vector<1x1x8x1xf32>
    %20 = vector.shape_cast %19 : vector<1x1x8x1xf32> to vector<8x1xf32>
    %21 = vector.shape_cast %18 : vector<8x1xf32> to vector<1x1x8x1xf32>
    tpu.vector_store %arg7[%c0_14, %c0_15, %c0_16, %c0_17], %21 {strides = array<i32>} : memref<1x1x8x1xf32, #tpu.memory_space<vmem>>, vector<1x1x8x1xf32>,
    return
  }
  func.func @transform_0(%arg0: i32, %arg1: i32, %arg2: i32) -> i32 {
    %c0_i32 = arith.constant 0 : i32
    %c0_i32_0 = arith.constant 0 : i32
    return %c0_i32 : i32
  }
  func.func @transform_1(%arg0: i32, %arg1: i32, %arg2: i32) -> (i32, i32, i32, i32) {
    %c0_i32 = arith.constant 0 : i32
    %c0_i32_0 = arith.constant 0 : i32
    return %arg0, %arg1, %arg2, %c0_i32 : i32, i32, i32, i32
  }
  func.func @transform_2(%arg0: i32, %arg1: i32, %arg2: i32) -> (i32, i32, i32, i32) {
    %c0_i32 = arith.constant 0 : i32
    %c0_i32_0 = arith.constant 0 : i32
    %c0_i32_1 = arith.constant 0 : i32
    return %arg0, %arg1, %c0_i32, %c0_i32_0 : i32, i32, i32, i32
  }
  func.func @transform_3(%arg0: i32, %arg1: i32, %arg2: i32) -> (i32, i32, i32, i32) {
    %c0_i32 = arith.constant 0 : i32
    %c0_i32_0 = arith.constant 0 : i32
    %c0_i32_1 = arith.constant 0 : i32
    %c0_i32_2 = arith.constant 0 : i32
    return %arg0, %c0_i32, %c0_i32_0, %c0_i32_1 : i32, i32, i32, i32
  }
  func.func @transform_4(%arg0: i32, %arg1: i32, %arg2: i32) -> (i32, i32, i32, i32) {
    %c0_i32 = arith.constant 0 : i32
    %c0_i32_0 = arith.constant 0 : i32
    return %arg0, %arg1, %arg2, %c0_i32 : i32, i32, i32, i32
  }
}

module attributes {stable_mosaic.version = 11 : i64} {
  func.func @_attn_ctx_kernel(%arg0: i32, %arg1: i32, %arg2: i32, %arg3: memref<3xf32, #tpu.memory_space<smem>>, %arg4: memref<1x1x8x8xbf16, #tpu.memory_space<vmem>>, %arg5: memref<1x1x8x8xbf16, #tpu.memory_space<vmem>>, %arg6: memref<1x1x8x8xbf16, #tpu.memory_space<vmem>>, %arg7: memref<1x1x1x8xf32, #tpu.memory_space<vmem>>, %arg8: memref<1x1x8x8xf32, #tpu.memory_space<vmem>>) attributes {dimension_semantics = [#tpu.dimension_semantics<parallel>, #tpu.dimension_semantics<parallel>, #tpu.dimension_semantics<parallel>], iteration_bounds = array<i64: 2, 4, 1>, scalar_prefetch = 0 : i64, scratch_operands = 0 : i64, tpu.core_type = #tpu.core_type<tc>, window_params = [{transform_indices = @transform_0, window_bounds = array<i64: 3>}, {transform_indices = @transform_1, window_bounds = array<i64: 1, 1, 8, 8>}, {transform_indices = @transform_2, window_bounds = array<i64: 1, 1, 8, 8>}, {transform_indices = @transform_3, window_bounds = array<i64: 1, 1, 8, 8>}, {transform_indices = @transform_4, window_bounds = array<i64: 1, 1, 1, 8>}, {transform_indices = @transform_5, window_bounds = array<i64: 1, 1, 8, 8>}]} {
    %c0 = arith.constant 0 : index
    %0 = memref.load %arg3[%c0] : memref<3xf32, #tpu.memory_space<smem>>
    %c0_0 = arith.constant 0 : index
    %c0_1 = arith.constant 0 : index
    %c0_2 = arith.constant 0 : index
    %c0_3 = arith.constant 0 : index
    %1 = vector.load %arg4[%c0_0, %c0_1, %c0_2, %c0_3] : memref<1x1x8x8xbf16, #tpu.memory_space<vmem>>, vector<1x1x8x8xbf16>
    %2 = vector.shape_cast %1 : vector<1x1x8x8xbf16> to vector<8x8xbf16>
    %c0_4 = arith.constant 0 : index
    %c0_5 = arith.constant 0 : index
    %c0_6 = arith.constant 0 : index
    %c0_7 = arith.constant 0 : index
    %3 = vector.load %arg5[%c0_4, %c0_5, %c0_6, %c0_7] : memref<1x1x8x8xbf16, #tpu.memory_space<vmem>>, vector<1x1x8x8xbf16>
    %4 = vector.shape_cast %3 : vector<1x1x8x8xbf16> to vector<8x8xbf16>
    %cst = arith.constant dense<0.000000e+00> : vector<8x8xf32>
    %5 = tpu.matmul %2, %4, %cst {dimension_numbers = #tpu.dot_dimension_numbers<[1], [1], [0], [0], [0, 0, 1, 0], [], []>} : vector<8x8xbf16>, vector<8x8xbf16>, vector<8x8xf32> -> vector<8x8xf32>
    %6 = vector.broadcast %0 : f32 to vector<8x8xf32>
    %7 = arith.mulf %5, %6 : vector<8x8xf32>
    %c0_8 = arith.constant 0 : index
    %c0_9 = arith.constant 0 : index
    %c0_10 = arith.constant 0 : index
    %c0_11 = arith.constant 0 : index
    %8 = vector.load %arg7[%c0_8, %c0_9, %c0_10, %c0_11] : memref<1x1x1x8xf32, #tpu.memory_space<vmem>>, vector<1x1x1x8xf32>
    %9 = vector.shape_cast %8 : vector<1x1x1x8xf32> to vector<1x8xf32>
    %10 = vector.broadcast %9 : vector<1x8xf32> to vector<8x8xf32>
    %11 = arith.addf %7, %10 : vector<8x8xf32>
    %cst_12 = arith.constant dense<0xFF800000> : vector<8xf32>
    %12 = vector.multi_reduction <maximumf>, %11, %cst_12 [1] : vector<8x8xf32> to vector<8xf32>
    %13 = vector.shape_cast %12 : vector<8xf32> to vector<8x1xf32>
    %14 = vector.broadcast %13 : vector<8x1xf32> to vector<8x8xf32>
    %15 = arith.subf %11, %14 : vector<8x8xf32>
    %16 = math.exp %15 : vector<8x8xf32>
    %cst_13 = arith.constant dense<0.000000e+00> : vector<8xf32>
    %17 = vector.multi_reduction <add>, %16, %cst_13 [1] : vector<8x8xf32> to vector<8xf32>
    %18 = vector.shape_cast %17 : vector<8xf32> to vector<8x1xf32>
    %19 = vector.broadcast %18 : vector<8x1xf32> to vector<8x8xf32>
    %20 = arith.divf %16, %19 : vector<8x8xf32>
    %c1 = arith.constant 1 : index
    %21 = memref.load %arg3[%c1] : memref<3xf32, #tpu.memory_space<smem>>
    %22 = vector.broadcast %21 : f32 to vector<8x8xf32>
    %23 = arith.mulf %20, %22 : vector<8x8xf32>
    %24 = math.roundeven %23 : vector<8x8xf32>
    %25 = arith.truncf %24 : vector<8x8xf32> to vector<8x8xbf16>
    %c0_14 = arith.constant 0 : index
    %c0_15 = arith.constant 0 : index
    %c0_16 = arith.constant 0 : index
    %c0_17 = arith.constant 0 : index
    %26 = vector.load %arg6[%c0_14, %c0_15, %c0_16, %c0_17] : memref<1x1x8x8xbf16, #tpu.memory_space<vmem>>, vector<1x1x8x8xbf16>
    %27 = vector.shape_cast %26 : vector<1x1x8x8xbf16> to vector<8x8xbf16>
    %cst_18 = arith.constant dense<0.000000e+00> : vector<8x8xf32>
    %28 = tpu.matmul %25, %27, %cst_18 {dimension_numbers = #tpu.dot_dimension_numbers<[1], [0], [0], [1], [0, 0, 1, 1], [], []>} : vector<8x8xbf16>, vector<8x8xbf16>, vector<8x8xf32> -> vector<8x8xf32>
    %c2 = arith.constant 2 : index
    %29 = memref.load %arg3[%c2] : memref<3xf32, #tpu.memory_space<smem>>
    %30 = vector.broadcast %29 : f32 to vector<8x8xf32>
    %31 = arith.mulf %28, %30 : vector<8x8xf32>
    %c0_19 = arith.constant 0 : index
    %c0_20 = arith.constant 0 : index
    %c0_21 = arith.constant 0 : index
    %c0_22 = arith.constant 0 : index
    %32 = vector.load %arg8[%c0_19, %c0_20, %c0_21, %c0_22] : memref<1x1x8x8xf32, #tpu.memory_space<vmem>>, vector<1x1x8x8xf32>
    %33 = vector.shape_cast %32 : vector<1x1x8x8xf32> to vector<8x8xf32>
    %34 = vector.shape_cast %31 : vector<8x8xf32> to vector<1x1x8x8xf32>
    tpu.vector_store %arg8[%c0_19, %c0_20, %c0_21, %c0_22], %34 {strides = array<i32>} : memref<1x1x8x8xf32, #tpu.memory_space<vmem>>, vector<1x1x8x8xf32>,
    return
  }
  func.func @transform_0(%arg0: i32, %arg1: i32, %arg2: i32) -> i32 {
    %c0_i32 = arith.constant 0 : i32
    %c0_i32_0 = arith.constant 0 : i32
    return %c0_i32 : i32
  }
  func.func @transform_1(%arg0: i32, %arg1: i32, %arg2: i32) -> (i32, i32, i32, i32) {
    %c0_i32 = arith.constant 0 : i32
    %c0_i32_0 = arith.constant 0 : i32
    return %arg0, %arg1, %arg2, %c0_i32 : i32, i32, i32, i32
  }
  func.func @transform_2(%arg0: i32, %arg1: i32, %arg2: i32) -> (i32, i32, i32, i32) {
    %c0_i32 = arith.constant 0 : i32
    %c0_i32_0 = arith.constant 0 : i32
    %c0_i32_1 = arith.constant 0 : i32
    return %arg0, %arg1, %c0_i32, %c0_i32_0 : i32, i32, i32, i32
  }
  func.func @transform_3(%arg0: i32, %arg1: i32, %arg2: i32) -> (i32, i32, i32, i32) {
    %c0_i32 = arith.constant 0 : i32
    %c0_i32_0 = arith.constant 0 : i32
    %c0_i32_1 = arith.constant 0 : i32
    return %arg0, %arg1, %c0_i32, %c0_i32_0 : i32, i32, i32, i32
  }
  func.func @transform_4(%arg0: i32, %arg1: i32, %arg2: i32) -> (i32, i32, i32, i32) {
    %c0_i32 = arith.constant 0 : i32
    %c0_i32_0 = arith.constant 0 : i32
    %c0_i32_1 = arith.constant 0 : i32
    %c0_i32_2 = arith.constant 0 : i32
    return %arg0, %c0_i32, %c0_i32_0, %c0_i32_1 : i32, i32, i32, i32
  }
  func.func @transform_5(%arg0: i32, %arg1: i32, %arg2: i32) -> (i32, i32, i32, i32) {
    %c0_i32 = arith.constant 0 : i32
    %c0_i32_0 = arith.constant 0 : i32
    return %arg0, %arg1, %arg2, %c0_i32 : i32, i32, i32, i32
  }
}

module attributes {stable_mosaic.version = 11 : i64} {
  func.func @_dense_kernel(%arg0: i32, %arg1: memref<1xf32, #tpu.memory_space<smem>>, %arg2: memref<1x8x32xbf16, #tpu.memory_space<vmem>>, %arg3: memref<32x32xbf16, #tpu.memory_space<vmem>>, %arg4: memref<1x32xf32, #tpu.memory_space<vmem>>, %arg5: memref<1x8x32xf32, #tpu.memory_space<vmem>>) attributes {dimension_semantics = [#tpu.dimension_semantics<parallel>], iteration_bounds = array<i64: 2>, scalar_prefetch = 0 : i64, scratch_operands = 0 : i64, tpu.core_type = #tpu.core_type<tc>, window_params = [{transform_indices = @transform_0, window_bounds = array<i64: 1>}, {transform_indices = @transform_1, window_bounds = array<i64: 1, 8, 32>}, {pipeline_mode = #tpu.pipeline_mode<synchronous>, transform_indices = @transform_2, window_bounds = array<i64: 32, 32>}, {pipeline_mode = #tpu.pipeline_mode<synchronous>, transform_indices = @transform_3, window_bounds = array<i64: 1, 32>}, {transform_indices = @transform_4, window_bounds = array<i64: 1, 8, 32>}]} {
    %c0 = arith.constant 0 : index
    %c0_0 = arith.constant 0 : index
    %c0_1 = arith.constant 0 : index
    %0 = vector.load %arg2[%c0, %c0_0, %c0_1] : memref<1x8x32xbf16, #tpu.memory_space<vmem>>, vector<1x8x32xbf16>
    %1 = vector.shape_cast %0 : vector<1x8x32xbf16> to vector<8x32xbf16>
    %c0_2 = arith.constant 0 : index
    %c0_3 = arith.constant 0 : index
    %2 = vector.load %arg3[%c0_2, %c0_3] : memref<32x32xbf16, #tpu.memory_space<vmem>>, vector<32x32xbf16>
    %cst = arith.constant dense<0.000000e+00> : vector<8x32xf32>
    %3 = tpu.matmul %1, %2, %cst {dimension_numbers = #tpu.dot_dimension_numbers<[1], [0], [0], [1], [0, 0, 1, 1], [], []>} : vector<8x32xbf16>, vector<32x32xbf16>, vector<8x32xf32> -> vector<8x32xf32>
    %c0_4 = arith.constant 0 : index
    %4 = memref.load %arg1[%c0_4] : memref<1xf32, #tpu.memory_space<smem>>
    %5 = vector.broadcast %4 : f32 to vector<8x32xf32>
    %6 = arith.mulf %3, %5 : vector<8x32xf32>
    %c0_5 = arith.constant 0 : index
    %c0_6 = arith.constant 0 : index
    %7 = vector.load %arg4[%c0_5, %c0_6] : memref<1x32xf32, #tpu.memory_space<vmem>>, vector<1x32xf32>
    %8 = vector.broadcast %7 : vector<1x32xf32> to vector<8x32xf32>
    %9 = arith.addf %6, %8 : vector<8x32xf32>
    %c0_7 = arith.constant 0 : index
    %c0_8 = arith.constant 0 : index
    %c0_9 = arith.constant 0 : index
    %10 = vector.load %arg5[%c0_7, %c0_8, %c0_9] : memref<1x8x32xf32, #tpu.memory_space<vmem>>, vector<1x8x32xf32>
    %11 = vector.shape_cast %10 : vector<1x8x32xf32> to vector<8x32xf32>
    %12 = vector.shape_cast %9 : vector<8x32xf32> to vector<1x8x32xf32>
    tpu.vector_store %arg5[%c0_7, %c0_8, %c0_9], %12 {strides = array<i32>} : memref<1x8x32xf32, #tpu.memory_space<vmem>>, vector<1x8x32xf32>,
    return
  }
  func.func @transform_0(%arg0: i32) -> i32 {
    %c0_i32 = arith.constant 0 : i32
    %c0_i32_0 = arith.constant 0 : i32
    return %c0_i32 : i32
  }
  func.func @transform_1(%arg0: i32) -> (i32, i32, i32) {
    %c0_i32 = arith.constant 0 : i32
    %c0_i32_0 = arith.constant 0 : i32
    %c0_i32_1 = arith.constant 0 : i32
    return %arg0, %c0_i32, %c0_i32_0 : i32, i32, i32
  }
  func.func @transform_2(%arg0: i32) -> (i32, i32) {
    %c0_i32 = arith.constant 0 : i32
    %c0_i32_0 = arith.constant 0 : i32
    %c0_i32_1 = arith.constant 0 : i32
    return %c0_i32, %c0_i32_0 : i32, i32
  }
  func.func @transform_3(%arg0: i32) -> (i32, i32) {
    %c0_i32 = arith.constant 0 : i32
    %c0_i32_0 = arith.constant 0 : i32
    %c0_i32_1 = arith.constant 0 : i32
    return %c0_i32, %c0_i32_0 : i32, i32
  }
  func.func @transform_4(%arg0: i32) -> (i32, i32, i32) {
    %c0_i32 = arith.constant 0 : i32
    %c0_i32_0 = arith.constant 0 : i32
    %c0_i32_1 = arith.constant 0 : i32
    return %arg0, %c0_i32, %c0_i32_0 : i32, i32, i32
  }
}

</mosaic_0001>

<bundles_post_ra>
// kernel: attention_forward.5
= control target key start
LH: loop header
LB: loop body
LE: loop exit
PB: predicated region body
PF: predicated region fallthrough
CT: control target
= control target key end

     0   :  { %s310_s12 = smov 0   ;;  %s343_s0 = inlined_call_operand.vmem [shape: f32[2,8,32], index: 0, kind: input, shape index: {}]   ;;  %s344_s1 = inlined_call_operand.vmem [shape: f32[1,1,32], index: 1, kind: input, shape index: {}]   ;;  %s345_s2 = inlined_call_operand.vmem [shape: f32[1,1,32], index: 2, kind: input, shape index: {}]   ;;  %s346_s3 = inlined_call_operand.vmem [shape: f32[2,8,32], index: 3, kind: output, shape index: {}]  }
   0x1 LB: > { %s259_s13 = sadd.s32 4294967295, %s288_s12   ;;  %p263_p0 = scmp.ge.s32.totalorder %s288_s12, 1  ;;  %s288_s12 = sphi %s310_s12, %s13_s12  }
   0x2   : > { %p136_p1 = scmp.lt.s32.totalorder %s288_s12, 3 }
   0x4   : > { %p137_p2 = pnand %p263_p0, %p136_p1 }
   0x5   : > { %p158_p3 = scmp.lt.s32.totalorder (!%p137_p2), %s259_s13, 1 }
   0x6   : > { %140 = sbr.rel (%p137_p2) target bundleno = 342 (0x156), region = 32 }
   0xb   : > { %s348_s13 = smov (!%p158_p3, %s259_s13), 1  ;;  %vm167_vm0 = vcmask 261120   ;;  %v266_v16 = vld [vmem:[%s344_s1] ss:$0 sm:$0xff] }
   0xc   : > { %s264_s14 = sshll.u32 %s348_s13, 3  ;;  %v267_v18 = vld [vmem:[%s345_s2] ss:$0 sm:$0xff] }
   0xd   : > { %s161_s17 = scalar_lea.vmem %s343_s0, %s264_s14  ;;  %s165_s24 = scalar_lea.vmem %s346_s3, %s264_s14 }
   0xe   : > { %v166_v0 = vld [vmem:[%s161_s17] sm:$0xff] }
   0xf   : > { %v168_v1 = vsel %vm167_vm0, %v166_v0, 0.0 }
  0x10   : > { %169 = vadd.xlane.f32.xlu0 %v168_v1 }
  0x99   : > { %v170_v2 = vpop.xlane.xlu0 %169 }
  0x9a   : > { %v172_v3 = vmul.f32 0.03125, %v170_v2 }
  0x9c   : > { %v173_v4 = vsub.f32 %v166_v0, %v172_v3 }
  0x9e   : > { %v174_v5 = vmul.f32 %v173_v4, %v173_v4 }
  0xa0   : > { %v175_v6 = vsel %vm167_vm0, %v174_v5, 0.0 }
  0xa1   : > { %176 = vadd.xlane.f32.xlu0 %v175_v6 }
 0x12a   : > { %v177_v7 = vpop.xlane.xlu0 %176 }
 0x12b   : > { %v178_v8 = vmul.f32 0.03125, %v177_v7 }
 0x12d   : > { %v179_v9 = vadd.f32 1e-12, %v178_v8 }
 0x12f   : > { %278 = vrsqrt.f32 %v179_v9  ;;  %vm182_vm1 = vcmp.eq.f32.partialorder %v179_v9, inf  ;;  %v185_v12 = vand.u32 2147483648, %v179_v9  ;;  %vm184_vm2 = vcmp.eq.f32.partialorder %v179_v9, 0.0 }
 0x13c   : > { %v279_v10 = vpop.eup %278 }
 0x13d   : > { %v181_v11 = vmul.f32 %v279_v10, %v179_v9 }
 0x13f   : > { %v183_v13 = vsel %vm182_vm1, %v179_v9, %v181_v11 }
 0x140   : > { %v186_v14 = vsel %vm184_vm2, %v185_v12, %v183_v13 }
 0x141   : > { %280 = vrcp.f32 %v186_v14 }
 0x14e   : > { %v281_v15 = vpop.eup %280 }
 0x14f   : > { %v188_v17 = vmul.f32 %v281_v15, %v173_v4 }
 0x151   : > { %v196_v19 = vmul.f32 %v266_v16, %v188_v17 }
 0x153   : > { %v204_v20 = vadd.f32 %v267_v18, %v196_v19 }
 0x155   : > { %205 = vst.msk [vmem:[%s165_s24] sm:$0xff] %vm167_vm0, %v204_v20 }
 0x156 PF: > { %s13_s12 = sadd.s32 1, %s288_s12  }
 0x157   : > { %p10_p4 = scmp.ge.s32.totalorder %s13_s12, 4  }
 0x159   :  { %12 = sbr.rel (!%p10_p4) target bundleno = 1 (0x1), region = 62 }

// kernel: attention_forward.7
= control target key start
LH: loop header
LB: loop body
LE: loop exit
PB: predicated region body
PF: predicated region fallthrough
CT: control target
= control target key end

     0   :  { %s639_s17 = smov 0   ;;  %s641_s18 = smov 0   ;;  %s704_s0 = inlined_call_operand.<no memory space> [shape: f32[1], index: 0, kind: input, shape index: {}]   ;;  %s705_s1 = inlined_call_operand.vmem [shape: bf16[2,4,8,8], index: 1, kind: input, shape index: {}]   ;;  %s706_s2 = inlined_call_operand.vmem [shape: bf16[2,4,8,8], index: 2, kind: input, shape index: {}]   ;;  %s707_s3 = inlined_call_operand.vmem [shape: f32[2,1,1,8], index: 3, kind: input, shape index: {}]   ;;  %s708_s4 = inlined_call_operand.vmem [shape: f32[2,4,8,1], index: 4, kind: output, shape index: {}]  }
   0x1   :  { %9 = sst [smem:[#allocation2]] %s704_s0  ;;  %s643_s19 = smov 0  }
   0x2   :  { %s645_s20 = smov 0   ;;  %s647_s21 = smov 0  }
   0x3 LB: > { %s30_s0 = sadd.s32 1, %s599_s19  ;;  %s34_s22 = sadd.s32 1, %s603_s20  ;;  %s607_s21 = sphi %s647_s21, %s15_s21   ;;  %s603_s20 = sphi %s645_s20, %s712_s20   ;;  %s599_s19 = sphi %s643_s19, %s711_s19   ;;  %s595_s18 = sphi %s641_s18, %s710_s18   ;;  %s591_s17 = sphi %s639_s17, %s709_s17  }
   0x4   : > { %p32_p0 = scmp.ge.s32.totalorder %s30_s0, 4  ;;  %p506_p1 = scmp.ge.s32.totalorder %s607_s21, 1 }
   0x5   : > { %p219_p2 = scmp.lt.s32.totalorder %s607_s21, 9 }
   0x6   : > { %s714_s0 = smov (%p32_p0, %s30_s0), 0  ;;  %s716_s22 = smov (!%p32_p0, %s34_s22), %s603_s20 }
   0x7   : > { %p220_p3 = pnand %p506_p1, %p219_p2  ;;  %p36_p4 = scmp.ge.s32.totalorder %s716_s22, 2 }
   0x8   : > { %p268_p5 = scmp.lt.s32.totalorder (!%p220_p3), %s595_s18, 1  ;;  %p270_p6 = scmp.lt.s32.totalorder (!%p220_p3), %s591_s17, 3 }
   0x9   : > { %s718_s22 = smov (%p36_p4, %s716_s22), 0  ;;  %223 = sbr.rel (%p220_p3) target bundleno = 522 (0x20a), region = 36 }
   0xa   : > { %s302_s6 = sld [smem:[#allocation2]] (!%p220_p3) }
   0xe   : > { %v609_v0 = vmov 0.0   ;;  %vm610_vm0 = vmmov 0   ;;  %s720_s18 = smov (!%p268_p5, %s595_s18), 1  ;;  %s722_s17 = smov (!%p270_p6, %s591_s17), 3  ;;  %vm305_vm1 = vcmask 64512   ;;  %vm371_vm2 = vcmask 7168  }
   0xf   : > { %519 = vmatprep.subr.bf16.mxu0 %v609_v0  ;;  %521 = vmatprep.mubr.msk.bf16.mxu0 %vm610_vm0, %v609_v0  ;;  %s507_s23 = sshll.u32 %s720_s18, 2  ;;  %s289_s9 = scalar_lea.vmem %s707_s3, %s720_s18 }
  0x10   : > { %s669_s24 = sadd.s32 %s507_s23, %s722_s17  ;;  %v352_v4 = vstv %s302_s6  ;;  %v514_v6 = vld [vmem:[%s289_s9] ss:$0 sm:$0xff] }
  0x11   : > { %s508_s25 = sshll.u32 %s669_s24, 2  ;;  %s512_s10 = sshll.u32 %s669_s24, 3 }
  0x12   : > { %s286_s28 = scalar_lea.vmem %s706_s2, %s508_s25  ;;  %s278_s5 = scalar_lea.vmem %s705_s1, %s508_s25 }
  0x13   : > { %v304_v1 = vld [vmem:[%s286_s28] sm:$0xf]  ;;  %s300_s13 = scalar_lea.vmem %s708_s4, %s512_s10 }
  0x14   : > { %v310_v2 = vsel %vm305_vm1, %v304_v1, 0  ;;  %v303_v3 = vld [vmem:[%s278_s5] sm:$0xf] }
  0x15   : > { %520 = vmatpush3.bf16.xpose.msra.mxu0 %v310_v2 }
  0x1c   : > { %522 = vmatmul.mubr.msk.bf16.vlgmr.msra.gmra.mxu0 %vm305_vm1, %v303_v3 }
  0xdc   : > { %v346_v5 = vpop.f32.mrf.mxu0 }
  0xdd   : > { %v353_v7 = vmul.f32 %v352_v4, %v346_v5 }
  0xde   : > { %v523_v8 = vpop.f32.mrf.mxu0 }
  0xdf   : > { %v361_v9 = vadd.f32 %v514_v6, %v353_v7 }
  0xe0   : > { %v349_v10 = vpop.f32.mrf.mxu0 }
  0xe1   : > { %v362_v11 = vsel %vm305_vm1, %v361_v9, -inf }
  0xe2   : > { %363 = vmax.xlane.f32.xlu0 %v362_v11  ;;  %v524_v12 = vpop.f32.mrf.mxu0 }
 0x16b   : > { %v364_v13 = vpop.xlane.xlu0 %363 }
 0x16c   : > { %v365_v14 = vsub.f32 %v361_v9, %v364_v13 }
 0x16e   : > { %v366_v15 = vmul.f32 1.442695, %v365_v14 }
 0x170   : > { %567 = vpow2.f32 %v366_v15 }
 0x17d   : > { %v568_v16 = vpop.eup %567 }
 0x17e   : > { %v368_v17 = vsel %vm305_vm1, %v568_v16, 0.0 }
 0x17f   : > { %369 = vadd.xlane.f32.xlu0 %v368_v17 }
 0x208   : > { %v370_v18 = vpop.xlane.xlu0 %369 }
 0x209   : > { %372 = vst.msk [vmem:[%s300_s13] sm:$0xff] %vm371_vm2, %v370_v18 }
 0x20a PF: > { %s15_s21 = sadd.s32 1, %s607_s21   ;;  %s709_s17 = smov %s599_s19 }
 0x20b   : > { %p12_p7 = scmp.ge.s32.totalorder %s15_s21, 10   ;;  %s710_s18 = smov %s603_s20 }
 0x20c   : > { %s711_s19 = smov %s714_s0  ;;  %s712_s20 = smov %s718_s22 }
 0x20d   :  { %14 = sbr.rel (!%p12_p7) target bundleno = 3 (0x3), region = 72 }

// kernel: attention_forward.6
= control target key start
LH: loop header
LB: loop body
LE: loop exit
PB: predicated region body
PF: predicated region fallthrough
CT: control target
= control target key end

     0   :  { %16 = vsyncpa [#allocation3], 0  ;;  %s899_s13 = smov 0   ;;  %s980_s0 = inlined_call_operand.vmem [shape: f32[3], index: 0, kind: input, shape index: {}]   ;;  %s981_s1 = inlined_call_operand.vmem [shape: bf16[2,8,32], index: 1, kind: input, shape index: {}]   ;;  %s982_s2 = inlined_call_operand.vmem [shape: bf16[32,32], index: 2, kind: input, shape index: {}]   ;;  %s983_s3 = inlined_call_operand.vmem [shape: f32[1,32], index: 3, kind: input, shape index: {}]   ;;  %s984_s4 = inlined_call_operand.vmem [shape: bf16[32,32], index: 4, kind: input, shape index: {}]   ;;  %s985_s5 = inlined_call_operand.vmem [shape: f32[1,32], index: 5, kind: input, shape index: {}]   ;;  %s986_s6 = inlined_call_operand.vmem [shape: bf16[32,32], index: 6, kind: input, shape index: {}]   ;;  %s987_s7 = inlined_call_operand.vmem [shape: f32[1,32], index: 7, kind: input, shape index: {}]   ;;  %s988_s8 = inlined_call_operand.vmem [shape: f32[2,8,32], index: 8, kind: output, shape index: {0}]   ;;  %s989_s9 = inlined_call_operand.vmem [shape: f32[2,8,32], index: 9, kind: output, shape index: {1}]   ;;  %s990_s10 = inlined_call_operand.vmem [shape: f32[2,8,32], index: 10, kind: output, shape index: {2}]  }
   0x1 LB: > { %s905_s14 = sadd.s32 4294967295, %s839_s13   ;;  %p729_p0 = scmp.ge.s32.totalorder %s839_s13, 1  ;;  %s839_s13 = sphi %s899_s13, %s22_s13  }
   0x2   : > { %p278_p1 = scmp.lt.s32.totalorder %s839_s13, 3  ;;  %s291_s17 = sshll.u32 %s980_s0, 4  ;;  %s292_s17 = int_to_ptr.vmem [resolvable:$true] %s291_s17 }
   0x3   : > { %p795_p3 = scmp.eq.s32.totalorder %s905_s14, 0  ;;  %s814_s19 = scalar_lea.vmem %s292_s17, 16 }
   0x4   : > { %p912_p2 = pnand %p729_p0, %p278_p1  ;;  %p815_p6 = scmp.ne.s32.totalorder %s292_s17, %s814_s19 }
   0x5   : > { %p822_p10 = scmp.lt.s32.totalorder %s292_s17, %s292_s17  ;;  %p823_p11 = scmp.lt.s32.totalorder %s814_s19, %s814_s19 }
   0x6   : > { %p791_p4 = pneg %p912_p2 }
   0x7   : > { %p824_p12 = por %p823_p11, %p822_p10 }
   0x8   : > { %p792_p5 = pnand %p795_p3, %p791_p4 }
   0xa   : > { %p816_p7 = pneg %p792_p5 }
   0xc   : > { %p817_p8 = pnand %p816_p7, %p815_p6 }
   0xe   : > { %p818_p9 = pneg %p817_p8 }
  0x10   : > { %p825_p13 = pnand %p824_p12, %p818_p9 }
  0x12   : > { %828 = shalt.err (!%p825_p13)
}
  0x13   : > { %s841_s20 = smov [#allocation2]   ;;  %329 = sbr.rel (%p912_p2) target bundleno = 243 (0xf3), region = 52 }
  0x14   : > { %794 = dma.vmem_to_smem (!%p792_p5), %s292_s17, 16, %s841_s20, [#allocation3]  }
  0x18   : > { %834 = dma.done.wait (%p795_p3), [#allocation3], 16  }
  0x19   : > { %836 = vsyncadd (%p795_p3), [#allocation3], 4294967280 }
  0x1a   : > { %335 = sfence }
  0x1b   : > { %v808_v0 = vld [vmem:[%s982_s2 + $0x8] sm:$0xff]   ;;  %v842_v1 = vmov 0.0   ;;  %v810_v3 = vld [vmem:[%s982_s2] sm:$0xff]   ;;  %vm843_vm0 = vmmov 0   ;;  %p374_p0 = scmp.lt.s32.totalorder %s905_s14, 1  ;;  %vm409_vm1 = vcmask 261120  }
  0x1c   : > { %763 = vmatprep.subr.bf16.mxu0 %v842_v1  ;;  %771 = vmatprep.subr.bf16.mxu1 %v842_v1  ;;  %v809_v2 = vld [vmem:[%s984_s4 + $0x8] sm:$0xff]   ;;  %v811_v4 = vld [vmem:[%s984_s4] sm:$0xff]   ;;  %s392_s19 = sld [smem:[#allocation2]] }
  0x1d   : > { %764 = vmatpush3.bf16.msra.mxu0 %v808_v0  ;;  %767 = vmatprep.mubr.msk.bf16.mxu0 %vm843_vm0, %v842_v1  ;;  %s993_s14 = smov (!%p374_p0, %s905_s14), 1  ;;  %v812_v5 = vld [vmem:[%s986_s6 + $0x8] sm:$0xff]   ;;  %v813_v7 = vld [vmem:[%s986_s6] sm:$0xff]   ;;  %s742_s20 = sld [smem:[#allocation2 + $0x1]] }
  0x1e   : > { %765 = vmatprep.subr.bf16.mxu0 %v842_v1  ;;  %772 = vmatpush3.bf16.msra.mxu1 %v809_v2  ;;  %s734_s29 = sshll.u32 %s993_s14, 2  ;;  %s747_s21 = sld [smem:[#allocation2 + $0x2]]  ;;  %v741_v11 = vld [vmem:[%s983_s3] ss:$0 sm:$0xff] }
  0x1f   : > { %773 = vmatprep.subr.bf16.mxu1 %v842_v1  ;;  %775 = vmatprep.mubr.msk.bf16.mxu1 %vm843_vm0, %v842_v1  ;;  %s377_s16 = scalar_lea.vmem %s981_s1, %s734_s29  ;;  %s735_s22 = sshll.u32 %s993_s14, 3  ;;  %v746_v14 = vld [vmem:[%s985_s5] ss:$0 sm:$0xff] }
  0x20   : > { %v391_v6 = vld [vmem:[%s377_s16] sm:$0xf]  ;;  %s381_s29 = scalar_lea.vmem %s988_s8, %s735_s22  ;;  %s385_s11 = scalar_lea.vmem %s989_s9, %s735_s22 }
  0x21   : > { %766 = vmatpush3.bf16.msra.mxu0 %v810_v3  ;;  %v751_v26 = vld [vmem:[%s987_s7] ss:$0 sm:$0xff]  ;;  %s389_s18 = scalar_lea.vmem %s990_s10, %s735_s22 }
  0x22   : > { %774 = vmatpush3.bf16.msra.mxu1 %v811_v4  ;;  %779 = vmatprep.subr.bf16.mxu0 %v842_v1  ;;  %v453_v8 = vstv %s392_s19 }
  0x23   : > { %v521_v9 = vstv %s742_s20 }
  0x24   : > { %768 = vmatmul.mubr.msk.bf16.vlgmr.msra.gmra.mxu0 %vm409_vm1, %v391_v6  ;;  %v589_v23 = vstv %s747_s21 }
  0x25   : > { %780 = vmatpush3.bf16.msra.mxu0 %v812_v5  ;;  %776 = vmatmul.mubr.msk.bf16.vlgmr.msra.gmra.mxu1 %vm409_vm1, %v391_v6 }
  0x26   : > { %781 = vmatprep.subr.bf16.mxu0 %v842_v1  ;;  %783 = vmatprep.mubr.msk.bf16.mxu0 %vm843_vm0, %v842_v1 }
  0x29   : > { %782 = vmatpush3.bf16.msra.mxu0 %v813_v7 }
  0x2c   : > { %784 = vmatmul.mubr.msk.bf16.vlgmr.msra.gmra.mxu0 %vm409_vm1, %v391_v6 }
  0xe4   : > { %v447_v10 = vpop.f32.mrf.mxu0 }
  0xe5   : > { %v454_v12 = vmul.f32 %v453_v8, %v447_v10  ;;  %v515_v13 = vpop.f32.mrf.mxu1 }
  0xe6   : > { %v769_v15 = vpop.f32.mrf.mxu0  ;;  %v522_v16 = vmul.f32 %v521_v9, %v515_v13 }
  0xe7   : > { %v462_v17 = vadd.f32 %v741_v11, %v454_v12  ;;  %v777_v18 = vpop.f32.mrf.mxu1 }
  0xe8   : > { %v530_v19 = vadd.f32 %v746_v14, %v522_v16  ;;  %v450_v20 = vpop.f32.mrf.mxu0 }
  0xe9   : > { %463 = vst.msk [vmem:[%s381_s29] sm:$0xff] %vm409_vm1, %v462_v17  ;;  %v518_v21 = vpop.f32.mrf.mxu1 }
  0xea   : > { %531 = vst.msk [vmem:[%s385_s11] sm:$0xff] %vm409_vm1, %v530_v19  ;;  %v770_v22 = vpop.f32.mrf.mxu0 }
  0xeb   : > { %v778_v24 = vpop.f32.mrf.mxu1 }
  0xec   : > { %v583_v25 = vpop.f32.mrf.mxu0 }
  0xed   : > { %v590_v27 = vmul.f32 %v589_v23, %v583_v25 }
  0xee   : > { %v785_v28 = vpop.f32.mrf.mxu0 }
  0xef   : > { %v598_v29 = vadd.f32 %v751_v26, %v590_v27 }
  0xf0   : > { %v586_v30 = vpop.f32.mrf.mxu0 }
  0xf1   : > { %599 = vst.msk [vmem:[%s389_s18] sm:$0xff] %vm409_vm1, %v598_v29 }
  0xf2   : > { %v786_v31 = vpop.f32.mrf.mxu0 }
  0xf3 PF: > { %s22_s13 = sadd.s32 1, %s839_s13  }
  0xf4   : > { %p19_p1 = scmp.ge.s32.totalorder %s22_s13, 4  }
  0xf6   :  { %21 = sbr.rel (!%p19_p1) target bundleno = 1 (0x1), region = 111 }
  0xfb   :  { %647 = vsyncpa [#allocation3], 1 }
  0xfc   :  { %649 = vsyncpa [#allocation3 + $0x1], 1 }

// kernel: attention_forward.8
= control target key start
LH: loop header
LB: loop body
LE: loop exit
PB: predicated region body
PF: predicated region fallthrough
CT: control target
= control target key end

     0   :  { %10 = vsyncpa [#allocation3], 0  ;;  %s856_s18 = smov 0   ;;  %s858_s19 = smov 0   ;;  %s961_s0 = inlined_call_operand.vmem [shape: f32[3], index: 0, kind: input, shape index: {}]   ;;  %s962_s1 = inlined_call_operand.vmem [shape: bf16[2,4,8,8], index: 1, kind: input, shape index: {}]   ;;  %s963_s2 = inlined_call_operand.vmem [shape: bf16[2,4,8,8], index: 2, kind: input, shape index: {}]   ;;  %s964_s3 = inlined_call_operand.vmem [shape: bf16[2,4,8,8], index: 3, kind: input, shape index: {}]   ;;  %s965_s4 = inlined_call_operand.vmem [shape: f32[2,1,1,8], index: 4, kind: input, shape index: {}]   ;;  %s966_s5 = inlined_call_operand.vmem [shape: f32[2,4,8,8], index: 5, kind: output, shape index: {}]  }
   0x1   :  { %s860_s20 = smov 0   ;;  %s862_s21 = smov 0  }
   0x2   :  { %s864_s22 = smov 0  }
   0x3 LB: > { %s661_s23 = sadd.s32 4294967295, %s821_s22   ;;  %s31_s24 = sadd.s32 1, %s813_s20  ;;  %s821_s22 = sphi %s864_s22, %s16_s22   ;;  %s817_s21 = sphi %s862_s21, %s972_s21   ;;  %s813_s20 = sphi %s860_s20, %s971_s20   ;;  %s809_s19 = sphi %s858_s19, %s970_s19   ;;  %s805_s18 = sphi %s856_s18, %s969_s18  }
   0x4   : > { %p33_p0 = scmp.ge.s32.totalorder %s31_s24, 4  ;;  %s35_s25 = sadd.s32 1, %s817_s21 }
   0x5   : > { %p663_p1 = scmp.ge.s32.totalorder %s821_s22, 1  ;;  %p203_p2 = scmp.lt.s32.totalorder %s821_s22, 9 }
   0x6   : > { %s974_s24 = smov (%p33_p0, %s31_s24), 0  ;;  %s976_s25 = smov (!%p33_p0, %s35_s25), %s817_s21 }
   0x7   : > { %p889_p3 = pnand %p663_p1, %p203_p2  ;;  %p37_p4 = scmp.ge.s32.totalorder %s976_s25, 2 }
   0x8   : > { %p893_p5 = scmp.eq.s32.totalorder %s661_s23, 0  ;;  %s216_s30 = sshll.u32 %s961_s0, 4  ;;  %s217_s30 = int_to_ptr.vmem [resolvable:$true] %s216_s30 }
   0x9   : > { %p711_p6 = pneg %p889_p3  ;;  %s978_s25 = smov (%p37_p4, %s976_s25), 0 }
   0xa   : > { %s764_s6 = scalar_lea.vmem %s217_s30, 16  ;;  %p772_p12 = scmp.lt.s32.totalorder %s217_s30, %s217_s30 }
   0xb   : > { %p712_p7 = pnand %p893_p5, %p711_p6  ;;  %p765_p8 = scmp.ne.s32.totalorder %s217_s30, %s764_s6 }
   0xc   : > { %p773_p13 = scmp.lt.s32.totalorder %s764_s6, %s764_s6 }
   0xd   : > { %p766_p9 = pneg %p712_p7 }
   0xe   : > { %p774_p0 = por %p773_p13, %p772_p12 }
   0xf   : > { %p767_p10 = pnand %p766_p9, %p765_p8 }
  0x11   : > { %p768_p11 = pneg %p767_p10 }
  0x13   : > { %p775_p1 = pnand %p774_p0, %p768_p11 }
  0x15   : > { %778 = shalt.err (!%p775_p1)
}
  0x16   : > { %s823_s7 = smov [#allocation2]   ;;  %271 = sbr.rel (%p889_p3) target bundleno = 767 (0x2ff), region = 40 }
  0x17   : > { %714 = dma.vmem_to_smem (!%p712_p7), %s217_s30, 16, %s823_s7, [#allocation3]  }
  0x1b   : > { %800 = dma.done.wait (%p893_p5), [#allocation3], 16  }
  0x1c   : > { %802 = vsyncadd (%p893_p5), [#allocation3], 4294967280 }
  0x1d   : > { %277 = sfence }
  0x1e   : > { %p331_p2 = scmp.lt.s32.totalorder %s809_s19, 1  ;;  %p333_p4 = scmp.lt.s32.totalorder %s805_s18, 3  ;;  %v824_v0 = vmov 0.0   ;;  %vm825_vm0 = vmmov 0   ;;  %vm376_vm1 = vcmask 64512   ;;  %vm453_vm2 = vcmask 1043456  }
  0x1f   : > { %687 = vmatprep.subr.bf16.mxu0 %v824_v0  ;;  %689 = vmatprep.mubr.msk.bf16.mxu0 %vm825_vm0, %v824_v0  ;;  %s373_s17 = sld [smem:[#allocation2]] }
  0x20   : > { %s980_s19 = smov (!%p331_p2, %s809_s19), 1  ;;  %693 = vmatprep.subr.bf16.mxu1 %v824_v0  ;;  %695 = vmatprep.mubr.msk.bf16.mxu1 %vm825_vm0, %v824_v0  ;;  %s982_s18 = smov (!%p333_p4, %s805_s18), 3 }
  0x21   : > { %s668_s8 = sshll.u32 %s980_s19, 2  ;;  %s360_s26 = scalar_lea.vmem %s965_s4, %s980_s19 }
  0x22   : > { %s916_s9 = sadd.s32 %s668_s8, %s982_s18  ;;  %v677_v6 = vld [vmem:[%s360_s26] ss:$0 sm:$0xff]  ;;  %s678_s29 = sld [smem:[#allocation2 + $0x1]] }
  0x23   : > { %s919_s10 = sshll.u32 %s916_s9, 2  ;;  %s680_s30 = sld [smem:[#allocation2 + $0x2]] }
  0x24   : > { %s349_s13 = scalar_lea.vmem %s963_s2, %s919_s10  ;;  %s341_s16 = scalar_lea.vmem %s962_s1, %s919_s10 }
  0x25   : > { %v375_v1 = vld [vmem:[%s349_s13] sm:$0xf]  ;;  %v423_v4 = vstv %s373_s17  ;;  %s357_s28 = scalar_lea.vmem %s964_s3, %s919_s10  ;;  %s675_s6 = sshll.u32 %s916_s9, 3 }
  0x26   : > { %v381_v2 = vsel %vm376_vm1, %v375_v1, 0  ;;  %v374_v3 = vld [vmem:[%s341_s16] sm:$0xf]  ;;  %s371_s10 = scalar_lea.vmem %s966_s5, %s675_s6 }
  0x27   : > { %688 = vmatpush3.bf16.xpose.msra.mxu0 %v381_v2  ;;  %v449_v18 = vld [vmem:[%s357_s28] sm:$0xf] }
  0x28   : > { %v455_v19 = vsel %vm453_vm2, %v449_v18, 0  ;;  %v445_v22 = vstv %s678_s29 }
  0x29   : > { %694 = vmatpush3.bf16.msra.mxu1 %v455_v19  ;;  %v498_v33 = vstv %s680_s30 }
  0x2e   : > { %690 = vmatmul.mubr.msk.bf16.vlgmr.msra.gmra.mxu0 %vm376_vm1, %v374_v3 }
  0xee   : > { %v417_v5 = vpop.f32.mrf.mxu0 }
  0xef   : > { %v424_v7 = vmul.f32 %v423_v4, %v417_v5 }
  0xf0   : > { %v691_v8 = vpop.f32.mrf.mxu0 }
  0xf1   : > { %v432_v9 = vadd.f32 %v677_v6, %v424_v7 }
  0xf2   : > { %v420_v10 = vpop.f32.mrf.mxu0 }
  0xf3   : > { %v433_v11 = vsel %vm376_vm1, %v432_v9, -inf }
  0xf4   : > { %434 = vmax.xlane.f32.xlu0 %v433_v11  ;;  %v692_v12 = vpop.f32.mrf.mxu0 }
 0x17d   : > { %v435_v13 = vpop.xlane.xlu0 %434 }
 0x17e   : > { %v436_v14 = vsub.f32 %v432_v9, %v435_v13 }
 0x180   : > { %v437_v15 = vmul.f32 1.442695, %v436_v14 }
 0x182   : > { %760 = vpow2.f32 %v437_v15 }
 0x18f   : > { %v761_v16 = vpop.eup %760 }
 0x190   : > { %v439_v17 = vsel %vm376_vm1, %v761_v16, 0.0 }
 0x191   : > { %440 = vadd.xlane.f32.xlu0 %v439_v17 }
 0x21a   : > { %v441_v20 = vpop.xlane.xlu0 %440 }
 0x21b   : > { %762 = vrcp.f32 %v441_v20 }
 0x228   : > { %v763_v21 = vpop.eup %762 }
 0x229   : > { %v443_v23 = vmul.f32 %v763_v21, %v761_v16 }
 0x22b   : > { %v446_v24 = vmul.f32 %v445_v22, %v443_v23 }
 0x22d   : > { %v701_v25 = vcvt.f32.s32 %v446_v24  ;;  %v699_v27 = vand.u32 2147483647, %v446_v24  ;;  %v704_v29 = vand.u32 2147483648, %v446_v24 }
 0x22f   : > { %v702_v26 = vcvt.s32.f32 %v701_v25  ;;  %vm700_vm3 = vcmp.lt.f32.partialorder %v699_v27, 8388608.0 }
 0x231   : > { %v703_v28 = vand.u32 2147483647, %v702_v26 }
 0x233   : > { %v705_v30 = vor.u32 %v704_v29, %v703_v28 }
 0x235   : > { %v706_v31 = vsel %vm700_vm3, %v705_v30, %v446_v24 }
 0x236   : > { %v448_v32 = vpack.c.bf16 %v706_v31, %v706_v31 }
 0x238   : > { %696 = vmatmul.mubr.msk.bf16.vlgmr.msra.gmra.mxu1 %vm376_vm1, %v448_v32 }
 0x2f8   : > { %v491_v34 = vpop.f32.mrf.mxu1 }
 0x2f9   : > { %v499_v35 = vmul.f32 %v498_v33, %v491_v34 }
 0x2fa   : > { %v697_v36 = vpop.f32.mrf.mxu1 }
 0x2fb   : > { %500 = vst.msk [vmem:[%s371_s10] sm:$0xff] %vm376_vm1, %v499_v35 }
 0x2fc   : > { %v494_v37 = vpop.f32.mrf.mxu1 }
 0x2fe   : > { %v698_v38 = vpop.f32.mrf.mxu1 }
 0x2ff PF: > { %s16_s22 = sadd.s32 1, %s821_s22   ;;  %s969_s18 = smov %s813_s20 }
 0x300   : > { %p13_p3 = scmp.ge.s32.totalorder %s16_s22, 10   ;;  %s970_s19 = smov %s817_s21 }
 0x301   : > { %s971_s20 = smov %s974_s24  ;;  %s972_s21 = smov %s978_s25 }
 0x302   :  { %15 = sbr.rel (!%p13_p3) target bundleno = 3 (0x3), region = 84 }
 0x307   :  { %534 = vsyncpa [#allocation3], 1 }
 0x308   :  { %536 = vsyncpa [#allocation3 + $0x1], 1 }

// kernel: attention_forward.9
= control target key start
LH: loop header
LB: loop body
LE: loop exit
PB: predicated region body
PF: predicated region fallthrough
CT: control target
= control target key end

     0   :  { %s612_s0 = inlined_call_operand.<no memory space> [shape: f32[1], index: 0, kind: input, shape index: {}]   ;;  %s613_s1 = inlined_call_operand.vmem [shape: bf16[2,8,32], index: 1, kind: input, shape index: {}]   ;;  %s614_s2 = inlined_call_operand.vmem [shape: bf16[32,32], index: 2, kind: input, shape index: {}]   ;;  %s615_s3 = inlined_call_operand.vmem [shape: f32[1,32], index: 3, kind: input, shape index: {}]   ;;  %s616_s4 = inlined_call_operand.hbm [shape: f32[2,8,32], index: 4, kind: output, shape index: {}]  }
   0x1   :  { %9 = sst [smem:[#allocation2]] %s612_s0 }
   0x2   :  { %10 = vsyncpa [#allocation4], 0 }
   0x3   :  { %12 = vsyncpa [#allocation4 + $0x1], 0  ;;  %s502_s17 = smov 0   ;;  %s504_s18 = smov 0  }
   0x4   :  { %s506_s19 = smov 0   ;;  %s508_s20 = smov 0  }
   0x5 LB: > { %s523_s0 = sadd.s32 4294967295, %s469_s20   ;;  %s341_s21 = sadd.s32 4294967294, %s469_s20   ;;  %s469_s20 = sphi %s508_s20, %s622_s20   ;;  %s465_s19 = sphi %s506_s19, %s621_s19   ;;  %s461_s18 = sphi %s504_s18, %s620_s18   ;;  %s457_s17 = sphi %s502_s17, %s619_s17  }
   0x6   : > { %s527_s22 = sadd.s32 1, %s469_s20   ;;  %s114_s23 = sadd.s32 1, %s465_s19 }
   0x7   : > { %s111_s24 = ssub.s32 %s469_s20, %s527_s22  ;;  %p124_p0 = scmp.ne.s32.totalorder %s465_s19, %s461_s18 }
   0x8   : > { %p112_p1 = scmp.eq.s32.totalorder %s111_s24, 0  ;;  %p125_p2 = scmp.eq.s32.totalorder %s523_s0, 1 }
   0x9   : > { %p130_p3 = scmp.ne.s32.totalorder %s461_s18, %s457_s17  ;;  %p131_p4 = scmp.eq.s32.totalorder %s341_s21, 1 }
   0xa   : > { %s538_s25 = scalar_select %p112_p1, %s465_s19, %s114_s23  }
   0xb   : > { %p540_p5 = por %p125_p2, %p124_p0  ;;  %p544_p6 = por %p131_p4, %p130_p3 }
   0xc   : > { %p344_p7 = scmp.ge.s32.totalorder %s469_s20, 1  ;;  %p165_p8 = scmp.lt.s32.totalorder %s469_s20, 3 }
   0xe   : > { %p166_p9 = pnand %p344_p7, %p165_p8 }
   0xf   : > { %p190_p10 = scmp.lt.s32.totalorder (!%p166_p9), %s523_s0, 1  ;;  %s256_s11 = sld [smem:[#allocation2]] (!%p166_p9) }
  0x10   : > { %169 = sbr.rel (%p166_p9) target bundleno = 241 (0xf1), region = 36  ;;  %s187_s12 = sand.u32 (!%p166_p9), 1, %s461_s18  }
  0x11   : > { %s345_s13 = sshll.u32 (!%p166_p9), %s187_s12, 3  ;;  %s352_s16 = sshll.u32 (!%p166_p9), %s523_s0, 7 }
  0x12   : > { %s189_s21 = scalar_lea.vmem (!%p166_p9), [#allocation3], %s345_s13  ;;  %s570_s29 = scalar_lea.hbm (!%p166_p9), %s616_s4, %s352_s16 }
  0x13   : > { %s282_s23 = sshll.u32 (!%p166_p9), %s189_s21, 4  ;;  %s473_s5 = smov (!%p166_p9), [#allocation3]   ;;  %s572_s23 = int_to_ptr.vmem [resolvable:$true] %s282_s23 }
  0x14   : > { %s409_s30 = scalar_lea.vmem (!%p166_p9), %s572_s23, 128 }
  0x15   : > { %v407_v0 = vld [vmem:[%s614_s2 + $0x8] sm:$0xff]   ;;  %v471_v1 = vmov 0.0   ;;  %v408_v2 = vld [vmem:[%s614_s2] sm:$0xff]   ;;  %vm472_vm0 = vmmov 0   ;;  %s191_s6 = scalar_select %p190_p10, %s523_s0, 1  ;;  %vm212_vm1 = vcmask 261120   ;;  %v257_v4 = vstv %s256_s11 }
  0x16   : > { %358 = vmatprep.subr.bf16.mxu0 %v471_v1  ;;  %362 = vmatprep.mubr.msk.bf16.mxu0 %vm472_vm0, %v471_v1  ;;  %v350_v6 = vld [vmem:[%s615_s3] ss:$0 sm:$0xff]  ;;  %s269_s0 = scalar_lea.sflag [#allocation4], %s187_s12  ;;  %p410_p11 = scmp.ne.s32.totalorder %s572_s23, %s409_s30 }
  0x17   : > { %359 = vmatpush3.bf16.msra.mxu0 %v407_v0  ;;  %s346_s7 = sshll.u32 %s191_s6, 2  ;;  %s413_s6 = sshll.u32 %s473_s5, 4  ;;  %s414_s6 = int_to_ptr.vmem [resolvable:$false] %s413_s6 }
  0x18   : > { %360 = vmatprep.subr.bf16.mxu0 %v471_v1  ;;  %s193_s10 = scalar_lea.vmem %s613_s1, %s346_s7  ;;  %p411_p12 = pnand %p410_p11, %p540_p5 }
  0x19   : > { %v195_v3 = vld [vmem:[%s193_s10] sm:$0xf]  ;;  %s415_s7 = scalar_lea.vmem %s414_s6, 256  ;;  %p416_p0 = scmp.lt.s32.totalorder %s572_s23, %s414_s6 }
  0x1a   : > { %p412_p13 = pneg %p411_p12  ;;  %p417_p1 = scmp.lt.s32.totalorder %s415_s7, %s409_s30 }
  0x1b   : > { %361 = vmatpush3.bf16.msra.mxu0 %v408_v2 }
  0x1c   : > { %p418_p2 = por %p417_p1, %p416_p0 }
  0x1e   : > { %363 = vmatmul.mubr.msk.bf16.vlgmr.msra.gmra.mxu0 %vm212_vm1, %v195_v3  ;;  %p419_p3 = pnand %p418_p2, %p412_p13 }
  0xde   : > { %v250_v5 = vpop.f32.mrf.mxu0 }
  0xdf   : > { %v258_v7 = vmul.f32 %v257_v4, %v250_v5 }
  0xe0   : > { %v364_v8 = vpop.f32.mrf.mxu0 }
  0xe1   : > { %v266_v9 = vadd.f32 %v350_v6, %v258_v7 }
  0xe2   : > { %v253_v10 = vpop.f32.mrf.mxu0 }
  0xe3   : > { %267 = vst.msk [vmem:[%s189_s21] sm:$0xff] %vm212_vm1, %v266_v9 }
  0xe4   : > { %v365_v11 = vpop.f32.mrf.mxu0 }
  0xe5   : > { %422 = shalt.err (!%p419_p3)
}
  0xe6   : > { %s423_s8 = scalar_lea.hbm %s570_s29, 128  ;;  %s427_s11 = scalar_lea.hbm %s616_s4, 256 }
  0xe7   : > { %p424_p4 = scmp.ne.s32.totalorder %s570_s29, %s423_s8  ;;  %p428_p9 = scmp.lt.s32.totalorder %s570_s29, %s616_s4 }
  0xe8   : > { %p429_p10 = scmp.lt.s32.totalorder %s427_s11, %s423_s8 }
  0xe9   : > { %p425_p7 = pnand %p424_p4, %p540_p5 }
  0xea   : > { %p430_p11 = por %p429_p10, %p428_p9 }
  0xeb   : > { %p426_p8 = pneg %p425_p7 }
  0xed   : > { %p431_p12 = pnand %p430_p11, %p426_p8 }
  0xef   : > { %434 = shalt.err (!%p431_p12)
}
  0xf0   : > { %366 = dma.vmem_to_hbm [thread:$0]  (%p540_p5), %s572_s23, 128, %s570_s29, %s269_s0  }
  0xf1 PF: > { %p372_p13 = scmp.ge.s32.totalorder %s469_s20, 2  ;;  %s294_s14 = sand.u32 1, %s457_s17  }
  0xf2   : > { %s295_s15 = scalar_lea.sflag [#allocation4], %s294_s14 }
  0xf3   : > { %p369_p0 = pnand %p372_p13, %p544_p6 }
  0xf5   : > { %p370_p1 = pneg %p369_p0 }
  0xf7   : > { %452 = dma.done.wait (%p370_p1), %s295_s15, 128  }
  0xf8   : > { %454 = vsyncadd (%p370_p1), %s295_s15, 4294967168  ;;  %p15_p2 = scmp.ge.s32.totalorder %s527_s22, 4   ;;  %s619_s17 = smov %s461_s18 }
  0xf9   : > { %s620_s18 = smov %s465_s19  ;;  %s621_s19 = smov %s538_s25 }
  0xfa   : > { %s622_s20 = smov %s527_s22  ;;  %17 = sbr.rel (!%p15_p2) target bundleno = 5 (0x5), region = 71 }
  0xff   :  { %300 = vsyncpa [#allocation4], 1 }
 0x100   :  { %302 = vsyncpa [#allocation4 + $0x1], 1 }

</bundles_post_ra>
